<compile_context>
chip_gen: v7x
topology: tpu7x:2x2x1
jax: 0.10.0
libtpu: 0.0.40
codegen_flags: <defaults>
</compile_context>

<pallas_src>
import functools

import jax
import jax.numpy as jnp
from jax.experimental import pallas as pl
from jax.experimental.pallas import tpu as pltpu


def aster_loss_kernel(emb_ref, semt_ref, rec_ref, tgt_ref, out_ref, *,
                      n_rows, inner_blocks):
    p = pl.program_id(0)   # parallel partition (v7x: one per TensorCore)
    i = pl.program_id(1)   # sequential row-blocks within the partition

    @pl.when(i == 0)
    def _init():
        out_ref[0, 0] = jnp.float32(0.0)   # recognition partial sum
        out_ref[0, 1] = jnp.float32(0.0)   # semantic loss (partition 0 only)

    # ---- semantic (cosine embedding) loss: computed exactly once -----------
    @pl.when(jnp.logical_and(p == 0, i == 0))
    def _sem():
        eps = 1e-12
        x1 = emb_ref[...].astype(jnp.float32)                  # [B, E]
        x2 = semt_ref[...].astype(jnp.float32)                 # [B, E]
        dot = jnp.sum(x1 * x2, axis=-1, keepdims=True)         # [B, 1]
        s1 = jnp.sum(x1 * x1, axis=-1, keepdims=True)
        s2 = jnp.sum(x2 * x2, axis=-1, keepdims=True)
        # cos = dot / (||x1||*||x2|| + eps)  ~=  dot * rsqrt(s1*s2 + eps^2)
        sim = dot * jax.lax.rsqrt(s1 * s2 + eps * eps)          # rsqrt -> EUP
        # CosineEmbeddingLoss with label_target == 1 everywhere -> mean(1 - sim)
        out_ref[0, 1] = jnp.sum(1.0 - sim) / float(x1.shape[0])

    # ---- recognition loss partial: sum over valid rows of (lse - logit[tgt]) ----
    logits = rec_ref[...].astype(jnp.float32)                  # [TN, C]
    tn, num_classes = logits.shape
    tgt = tgt_ref[...]                                         # [TN, 1] int32 (-1 == masked)

    blk = p * inner_blocks + i                                 # logical (unclamped) block id
    row_idx = jax.lax.broadcasted_iota(jnp.int32, (tn, 1), 0) + blk * tn
    valid = jnp.logical_and(tgt >= 0, row_idx < n_rows)        # [TN, 1]

    m = jnp.max(logits, axis=-1, keepdims=True)                # [TN, 1]
    lse = jnp.log(jnp.sum(jnp.exp(logits - m), axis=-1, keepdims=True)) + m
    col = jax.lax.broadcasted_iota(jnp.int32, (tn, num_classes), 1)
    # logit[target] as a lane-masked reduce (all-zero row when tgt == -1).
    picked = jnp.sum(jnp.where(col == tgt, logits, 0.0), axis=-1, keepdims=True)

    # -log_softmax(logits)[target] == lse - logit[target]; invalid/out-of-range
    # rows (including garbage-padded grid-edge / overhang rows) contribute 0.
    contrib = jnp.where(valid, lse - picked, 0.0)
    out_ref[0, 0] += jnp.sum(contrib)


def _round_up(x, m):
    return ((x + m - 1) // m) * m


def aster_loss(embedding_vectors, rec_pred, targets, label_lengths, sem_target, *,
               sequence_normalize=False, sample_normalize=True, tile_rows=None):
    B, T, C = rec_pred.shape
    N = B * T

    # TODO(synk): the torch module asserts max(label_lengths) == rec_pred.shape[1];
    # that would require a blocking device->host sync, so it is skipped. The
    # masking below stays correct for any label_lengths <= T.

    # Fold the length mask into the targets: masked rows get target -1, which
    # yields a zero picked-logit (and hence zero contribution) inside the kernel.
    ll = label_lengths.astype(jnp.int32)
    row_valid = jnp.arange(T, dtype=jnp.int32)[None, :] < ll[:, None]
    tgt_flat = jnp.where(row_valid, targets[:, :T].astype(jnp.int32), -1).reshape(N, 1)

    rec_flat = rec_pred.reshape(N, C)   # no host-side dtype cast; kernel casts in VMEM

    itemsize = jnp.dtype(rec_pred.dtype).itemsize
    # Row-tile size: 2 double-buffered input blocks + ~4 f32 working copies of
    # one block under ~12 MiB -> fits default scoped VMEM on v5e/v6e/v7x.
    if tile_rows is None:
        per_row_bytes = 2 * C * itemsize + 4 * C * 4
        tile_rows = max(8, min(1024, ((12 * 1024 * 1024) // per_row_bytes) // 8 * 8))
    tn = min(int(tile_rows), _round_up(N, 8))
    nblocks = -(-N // tn)
    num_parts = 2 if nblocks >= 2 else 1      # outer "parallel" axis (v7x: 2 TCs)
    inner = -(-nblocks // num_parts)

    def blk_idx(p_, i_):
        # Clamp so overhang blocks (when num_parts*inner > nblocks) re-read the
        # last real block; the in-kernel row mask zeroes their contribution.
        return (jnp.minimum(p_ * inner + i_, nblocks - 1), 0)

    kernel = functools.partial(aster_loss_kernel, n_rows=N, inner_blocks=inner)

    cost = pl.CostEstimate(
        flops=6 * N * C,
        transcendentals=N * C,
        bytes_accessed=N * C * itemsize + N * 4 + 2 * embedding_vectors.size * 4)

    partials = pl.pallas_call(
        kernel,
        out_shape=jax.ShapeDtypeStruct((num_parts, 2), jnp.float32),
        grid=(num_parts, inner),
        in_specs=[
            pl.BlockSpec(memory_space=pltpu.MemorySpace.VMEM),  # embedding [B, E] (whole, resident)
            pl.BlockSpec(memory_space=pltpu.MemorySpace.VMEM),  # sem_target [B, E]
            pl.BlockSpec((tn, C), blk_idx),                     # logits block, double-buffered
            pl.BlockSpec((tn, 1), blk_idx),                     # targets block (mask folded in)
        ],
        out_specs=pl.BlockSpec((1, 2), lambda p_, i_: (p_, 0),
                               memory_space=pltpu.MemorySpace.SMEM),
        compiler_params=pltpu.CompilerParams(
            dimension_semantics=("parallel", "arbitrary")),
        cost_estimate=cost,
    )(embedding_vectors, sem_target, rec_flat, tgt_flat)

    rec_loss = jnp.sum(partials[:, 0])
    sem_loss = jnp.sum(partials[:, 1])
    if sequence_normalize:
        # sum(mask) == sum(clip(label_lengths, 0, T)); guarded against 0.
        denom = jnp.maximum(jnp.sum(jnp.clip(ll, 0, T)).astype(jnp.float32), 1.0)
        rec_loss = rec_loss / denom
    if sample_normalize:
        rec_loss = rec_loss / B
    return {"loss": rec_loss + 0.1 * sem_loss}


def _reference_loss(embedding_vectors, rec_pred, targets, label_lengths, sem_target):
    """Pure-jnp reference mirroring the PyTorch forward (sample_normalize=True)."""
    B, T, C = rec_pred.shape
    eps = 1e-12
    x1, x2 = embedding_vectors.astype(jnp.float32), sem_target.astype(jnp.float32)
    sim = jnp.sum(x1 * x2, -1) / (jnp.linalg.norm(x1, axis=-1) *
                                  jnp.linalg.norm(x2, axis=-1) + eps)
    sem_loss = jnp.mean(1.0 - sim)   # label_target == 1 everywhere

    mask = (jnp.arange(T)[None, :] < label_lengths[:, None]).astype(jnp.float32)
    logp = jax.nn.log_softmax(rec_pred.reshape(-1, C).astype(jnp.float32), axis=1)
    tgt = targets.reshape(-1)
    picked = jnp.take_along_axis(logp, tgt[:, None], axis=1)
    output = jnp.sum(-picked * mask.reshape(-1, 1)) / B   # sample_normalize
    return output + sem_loss * 0.1


if __name__ == "__main__":
    keys = jax.random.split(jax.random.PRNGKey(0), 8)

    # Case 1: small single-block path.
    B, T, C, E = 2, 8, 32, 32
    emb = jax.random.normal(keys[0], (B, E), jnp.float32)
    semt = jax.random.normal(keys[1], (B, E), jnp.float32)
    rec = jax.random.normal(keys[2], (B, T, C), jnp.float32)
    tgt = jax.random.randint(keys[3], (B, T), 0, C, jnp.int32)
    lens = jnp.array([T, 5], jnp.int32)   # max == T (matches torch convention)

    out = aster_loss(emb, rec, tgt, lens, semt)
    loss = jax.block_until_ready(out["loss"])
    ref = _reference_loss(emb, rec, tgt, lens, semt)
    assert jnp.allclose(loss, ref, rtol=1e-5, atol=1e-5), (loss, ref)

    # Case 2: exercises the tiled, 2-partition path with a partial last block
    # and a clamped overhang block (N=21 rows, TN=8 -> 3 real blocks over a
    # (2, 2) grid).
    B2, T2, C2, E2 = 3, 7, 160, 64
    emb2 = jax.random.normal(keys[4], (B2, E2), jnp.float32)
    semt2 = jax.random.normal(keys[5], (B2, E2), jnp.float32)
    rec2 = jax.random.normal(keys[6], (B2, T2, C2), jnp.float32)
    tgt2 = jax.random.randint(keys[7], (B2, T2), 0, C2, jnp.int32)
    lens2 = jnp.array([T2, 5, 3], jnp.int32)

    out2 = aster_loss(emb2, rec2, tgt2, lens2, semt2, tile_rows=8)
    loss2 = jax.block_until_ready(out2["loss"])
    ref2 = _reference_loss(emb2, rec2, tgt2, lens2, semt2)
    assert jnp.allclose(loss2, ref2, rtol=1e-5, atol=1e-5), (loss2, ref2)

    print("KERNEL_OK")
</pallas_src>

<mosaic_0001>
module attributes {stable_mosaic.version = 11 : i64} {
  func.func @aster_loss_kernel(%arg0: i32, %arg1: i32, %arg2: memref<2x32xf32, #tpu.memory_space<vmem>>, %arg3: memref<2x32xf32, #tpu.memory_space<vmem>>, %arg4: memref<16x32xf32, #tpu.memory_space<vmem>>, %arg5: memref<16x1xi32, #tpu.memory_space<vmem>>, %arg6: memref<1x2xf32, #tpu.memory_space<smem>>) attributes {dimension_semantics = [#tpu.dimension_semantics<parallel>, #tpu.dimension_semantics<arbitrary>], iteration_bounds = array<i64: 1, 1>, scalar_prefetch = 0 : i64, scratch_operands = 0 : i64, tpu.core_type = #tpu.core_type<tc>, window_params = [{pipeline_mode = #tpu.pipeline_mode<synchronous>, transform_indices = @transform_0, window_bounds = array<i64: 2, 32>}, {pipeline_mode = #tpu.pipeline_mode<synchronous>, transform_indices = @transform_1, window_bounds = array<i64: 2, 32>}, {transform_indices = @transform_2, window_bounds = array<i64: 16, 32>}, {transform_indices = @transform_3, window_bounds = array<i64: 16, 1>}, {transform_indices = @transform_4, window_bounds = array<i64: 1, 2>}]} {
    %c0_i32 = arith.constant 0 : i32
    %0 = arith.cmpi eq, %arg1, %c0_i32 : i32
    %1 = arith.extui %0 : i1 to i32
    %c0_i32_0 = arith.constant 0 : i32
    %2 = arith.cmpi ne, %1, %c0_i32_0 : i32
    scf.if %2 {
      %cst_18 = arith.constant 0.000000e+00 : f32
      %c0_19 = arith.constant 0 : index
      %c0_20 = arith.constant 0 : index
      %47 = memref.load %arg6[%c0_19, %c0_20] : memref<1x2xf32, #tpu.memory_space<smem>>
      memref.store %cst_18, %arg6[%c0_19, %c0_20] : memref<1x2xf32, #tpu.memory_space<smem>>
      %cst_21 = arith.constant 0.000000e+00 : f32
      %c0_22 = arith.constant 0 : index
      %c1 = arith.constant 1 : index
      %48 = memref.load %arg6[%c0_22, %c1] : memref<1x2xf32, #tpu.memory_space<smem>>
      memref.store %cst_21, %arg6[%c0_22, %c1] : memref<1x2xf32, #tpu.memory_space<smem>>
    } else {
    }
    %c0_i32_1 = arith.constant 0 : i32
    %3 = arith.cmpi eq, %arg0, %c0_i32_1 : i32
    %c0_i32_2 = arith.constant 0 : i32
    %4 = arith.cmpi eq, %arg1, %c0_i32_2 : i32
    %5 = arith.andi %3, %4 : i1
    %6 = arith.extui %5 : i1 to i32
    %c0_i32_3 = arith.constant 0 : i32
    %7 = arith.cmpi ne, %6, %c0_i32_3 : i32
    scf.if %7 {
      %c0_18 = arith.constant 0 : index
      %c0_19 = arith.constant 0 : index
      %47 = vector.load %arg2[%c0_18, %c0_19] : memref<2x32xf32, #tpu.memory_space<vmem>>, vector<2x32xf32>
      %c0_20 = arith.constant 0 : index
      %c0_21 = arith.constant 0 : index
      %48 = vector.load %arg3[%c0_20, %c0_21] : memref<2x32xf32, #tpu.memory_space<vmem>>, vector<2x32xf32>
      %49 = arith.mulf %47, %48 : vector<2x32xf32>
      %cst_22 = arith.constant dense<0.000000e+00> : vector<2xf32>
      %50 = vector.multi_reduction <add>, %49, %cst_22 [1] : vector<2x32xf32> to vector<2xf32>
      %51 = vector.shape_cast %50 : vector<2xf32> to vector<2x1xf32>
      %52 = arith.mulf %47, %47 : vector<2x32xf32>
      %cst_23 = arith.constant dense<0.000000e+00> : vector<2xf32>
      %53 = vector.multi_reduction <add>, %52, %cst_23 [1] : vector<2x32xf32> to vector<2xf32>
      %54 = vector.shape_cast %53 : vector<2xf32> to vector<2x1xf32>
      %55 = arith.mulf %48, %48 : vector<2x32xf32>
      %cst_24 = arith.constant dense<0.000000e+00> : vector<2xf32>
      %56 = vector.multi_reduction <add>, %55, %cst_24 [1] : vector<2x32xf32> to vector<2xf32>
      %57 = vector.shape_cast %56 : vector<2xf32> to vector<2x1xf32>
      %58 = arith.mulf %54, %57 : vector<2x1xf32>
      %cst_25 = arith.constant 1.000000e-24 : f32
      %59 = vector.broadcast %cst_25 : f32 to vector<2x1xf32>
      %60 = arith.addf %58, %59 : vector<2x1xf32>
      %61 = math.rsqrt %60 : vector<2x1xf32>
      %62 = arith.mulf %51, %61 : vector<2x1xf32>
      %cst_26 = arith.constant 1.000000e+00 : f32
      %63 = vector.broadcast %cst_26 : f32 to vector<2x1xf32>
      %64 = arith.subf %63, %62 : vector<2x1xf32>
      %65 = vector.shape_cast %64 : vector<2x1xf32> to vector<1x2x1xf32>
      %cst_27 = arith.constant dense<0.000000e+00> : vector<1xf32>
      %66 = vector.multi_reduction <add>, %65, %cst_27 [1, 2] : vector<1x2x1xf32> to vector<1xf32>
      %67 = vector.shape_cast %66 : vector<1xf32> to vector<1x1x1xf32>
      %68 = vector.extract %67[0, 0, 0] : f32 from vector<1x1x1xf32>
      %cst_28 = arith.constant 2.000000e+00 : f32
      %69 = arith.divf %68, %cst_28 : f32
      %c0_29 = arith.constant 0 : index
      %c1 = arith.constant 1 : index
      %70 = memref.load %arg6[%c0_29, %c1] : memref<1x2xf32, #tpu.memory_space<smem>>
      memref.store %69, %arg6[%c0_29, %c1] : memref<1x2xf32, #tpu.memory_space<smem>>
    } else {
    }
    %c0 = arith.constant 0 : index
    %c0_4 = arith.constant 0 : index
    %8 = vector.load %arg4[%c0, %c0_4] : memref<16x32xf32, #tpu.memory_space<vmem>>, vector<16x32xf32>
    %c0_5 = arith.constant 0 : index
    %c0_6 = arith.constant 0 : index
    %9 = vector.load %arg5[%c0_5, %c0_6] : memref<16x1xi32, #tpu.memory_space<vmem>>, vector<16x1xi32>
    %c1_i32 = arith.constant 1 : i32
    %10 = arith.muli %arg0, %c1_i32 : i32
    %11 = arith.addi %10, %arg1 : i32
    %12 = tpu.iota {dimensions = array<i32: 0>} : vector<16x1xi32>
    %c16_i32 = arith.constant 16 : i32
    %13 = arith.muli %11, %c16_i32 : i32
    %14 = vector.broadcast %13 : i32 to vector<16x1xi32>
    %15 = arith.addi %12, %14 : vector<16x1xi32>
    %c0_i32_7 = arith.constant 0 : i32
    %16 = vector.broadcast %c0_i32_7 : i32 to vector<16x1xi32>
    %17 = arith.cmpi sge, %9, %16 : vector<16x1xi32>
    %c16_i32_8 = arith.constant 16 : i32
    %18 = vector.broadcast %c16_i32_8 : i32 to vector<16x1xi32>
    %19 = arith.cmpi slt, %15, %18 : vector<16x1xi32>
    %20 = arith.andi %17, %19 : vector<16x1xi1>
    %cst = arith.constant dense<0xFF800000> : vector<16xf32>
    %21 = vector.multi_reduction <maximumf>, %8, %cst [1] : vector<16x32xf32> to vector<16xf32>
    %22 = vector.shape_cast %21 : vector<16xf32> to vector<16x1xf32>
    %23 = vector.broadcast %22 : vector<16x1xf32> to vector<16x32xf32>
    %24 = arith.subf %8, %23 : vector<16x32xf32>
    %25 = math.exp %24 : vector<16x32xf32>
    %cst_9 = arith.constant dense<0.000000e+00> : vector<16xf32>
    %26 = vector.multi_reduction <add>, %25, %cst_9 [1] : vector<16x32xf32> to vector<16xf32>
    %27 = vector.shape_cast %26 : vector<16xf32> to vector<16x1xf32>
    %28 = math.log %27 : vector<16x1xf32>
    %29 = arith.addf %28, %22 : vector<16x1xf32>
    %30 = tpu.iota {dimensions = array<i32: 1>} : vector<16x32xi32>
    %31 = vector.broadcast %9 : vector<16x1xi32> to vector<16x32xi32>
    %32 = arith.cmpi eq, %30, %31 : vector<16x32xi32>
    %cst_10 = arith.constant 0.000000e+00 : f32
    %33 = vector.broadcast %cst_10 : f32 to vector<16x32xf32>
    %34 = arith.select %32, %8, %33 : vector<16x32xi1>, vector<16x32xf32>
    %cst_11 = arith.constant dense<0.000000e+00> : vector<16xf32>
    %35 = vector.multi_reduction <add>, %34, %cst_11 [1] : vector<16x32xf32> to vector<16xf32>
    %36 = vector.shape_cast %35 : vector<16xf32> to vector<16x1xf32>
    %37 = arith.subf %29, %36 : vector<16x1xf32>
    %cst_12 = arith.constant 0.000000e+00 : f32
    %38 = vector.broadcast %cst_12 : f32 to vector<16x1xf32>
    %39 = arith.select %20, %37, %38 : vector<16x1xi1>, vector<16x1xf32>
    %c0_13 = arith.constant 0 : index
    %c0_14 = arith.constant 0 : index
    %40 = memref.load %arg6[%c0_13, %c0_14] : memref<1x2xf32, #tpu.memory_space<smem>>
    %41 = vector.shape_cast %39 : vector<16x1xf32> to vector<1x16x1xf32>
    %cst_15 = arith.constant dense<0.000000e+00> : vector<1xf32>
    %42 = vector.multi_reduction <add>, %41, %cst_15 [1, 2] : vector<1x16x1xf32> to vector<1xf32>
    %43 = vector.shape_cast %42 : vector<1xf32> to vector<1x1x1xf32>
    %44 = vector.extract %43[0, 0, 0] : f32 from vector<1x1x1xf32>
    %45 = arith.addf %40, %44 : f32
    %c0_16 = arith.constant 0 : index
    %c0_17 = arith.constant 0 : index
    %46 = memref.load %arg6[%c0_16, %c0_17] : memref<1x2xf32, #tpu.memory_space<smem>>
    memref.store %45, %arg6[%c0_16, %c0_17] : memref<1x2xf32, #tpu.memory_space<smem>>
    return
  }
  func.func @transform_0(%arg0: i32, %arg1: i32) -> (i32, i32) {
    %c0_i32 = arith.constant 0 : i32
    %c0_i32_0 = arith.constant 0 : i32
    %c0_i32_1 = arith.constant 0 : i32
    return %c0_i32, %c0_i32_0 : i32, i32
  }
  func.func @transform_1(%arg0: i32, %arg1: i32) -> (i32, i32) {
    %c0_i32 = arith.constant 0 : i32
    %c0_i32_0 = arith.constant 0 : i32
    %c0_i32_1 = arith.constant 0 : i32
    return %c0_i32, %c0_i32_0 : i32, i32
  }
  func.func @transform_2(%arg0: i32, %arg1: i32) -> (i32, i32) {
    %c1_i32 = arith.constant 1 : i32
    %0 = arith.muli %arg0, %c1_i32 : i32
    %1 = arith.addi %0, %arg1 : i32
    %c0_i32 = arith.constant 0 : i32
    %2 = arith.minsi %1, %c0_i32 : i32
    %c0_i32_0 = arith.constant 0 : i32
    %c0_i32_1 = arith.constant 0 : i32
    return %2, %c0_i32_0 : i32, i32
  }
  func.func @transform_3(%arg0: i32, %arg1: i32) -> (i32, i32) {
    %c1_i32 = arith.constant 1 : i32
    %0 = arith.muli %arg0, %c1_i32 : i32
    %1 = arith.addi %0, %arg1 : i32
    %c0_i32 = arith.constant 0 : i32
    %2 = arith.minsi %1, %c0_i32 : i32
    %c0_i32_0 = arith.constant 0 : i32
    %c0_i32_1 = arith.constant 0 : i32
    return %2, %c0_i32_0 : i32, i32
  }
  func.func @transform_4(%arg0: i32, %arg1: i32) -> (i32, i32) {
    %c0_i32 = arith.constant 0 : i32
    %c0_i32_0 = arith.constant 0 : i32
    return %arg0, %c0_i32 : i32, i32
  }
}

</mosaic_0001>

<bundles_post_ra>
// kernel: tpu_custom_call.1
= control target key start
LH: loop header
LB: loop body
LE: loop exit
PB: predicated region body
PF: predicated region fallthrough
CT: control target
= control target key end

     0   :  { %vm149_vm0 = vcmask 261120   ;;  %v269_v4 = vmov 0   ;;  %s343_s0 = inlined_call_operand.vmem [shape: f32[2,32], index: 0, kind: input, shape index: {}]   ;;  %s344_s1 = inlined_call_operand.vmem [shape: f32[2,32], index: 1, kind: input, shape index: {}]   ;;  %s345_s2 = inlined_call_operand.vmem [shape: f32[16,32], index: 2, kind: input, shape index: {}]   ;;  %s346_s3 = inlined_call_operand.vmem [shape: s32[16,1], index: 3, kind: input, shape index: {}]   ;;  %s347_s4 = inlined_call_operand.hbm [shape: f32[1,2], index: 4, kind: output, shape index: {}]  }
   0x1   :  { %v131_v0 = vld [vmem:[%s345_s2] sm:$0xff]  ;;  %v132_v1 = vld [vmem:[%s345_s2 + $0x8] sm:$0xff]  ;;  %245 = vset.pattern.permute.xlu1 %v269_v4  ;;  %246 = vset.pattern.permute.xlu0 %v269_v4 }
   0x2   :  { %v305_v2 = vld [vmem:[%s346_s3] sm:$0xff]  ;;  %v150_v3 = vsel %vm149_vm0, %v131_v0, -inf }
   0x3   :  { %9 = vsyncpa [#allocation3], 0  ;;  %151 = vmax.xlane.f32.xlu0 %v150_v3  ;;  %177 = vperm.xlu1 %245, %v305_v2   ;;  %v153_v5 = vsel %vm149_vm0, %v132_v1, -inf  ;;  %v313_v6 = vld [vmem:[%s346_s3 + $0x8] sm:$0xff]  ;;  %v95_v13 = vld [vmem:[%s343_s0] sm:$0x3]  ;;  %v174_v14 = vlaneseq }
   0x4   :  { %v102_v15 = vmul.f32 %v95_v13, %v95_v13  ;;  %vm98_vm1 = vcmask 254976   ;;  %v96_v18 = vld [vmem:[%s344_s1] sm:$0x3]  ;;  %vm143_vm4 = vcmp.ge.s32.totalorder %v305_v2, 0  ;;  %vm144_vm5 = vcmp.ge.s32.totalorder %v313_v6, 0  ;;  %s257_s28 = scalar_lea.hbm %s347_s4, 16 }
   0x5   :  { %v175_v20 = vand.u32 127, %v174_v14  ;;  %v106_v22 = vmul.f32 %v96_v18, %v96_v18  ;;  %v97_v31 = vmul.f32 %v96_v18, %v95_v13  ;;  %vm197_vm6 = vcmask 7168   ;;  %p258_p0 = scmp.ne.s32.totalorder %s347_s4, %s257_s28  ;;  %p261_p1 = scmp.lt.u32.totalorder %s257_s28, %s347_s4 }
   0x6   :  { %v103_v21 = vsel %vm98_vm1, %v102_v15, 0.0  ;;  %vm115_vm7 = vcmask 1024  }
   0x7   :  { %154 = vmax.xlane.f32.xlu0 %v153_v5  ;;  %180 = vperm.xlu1 %245, %v313_v6   ;;  %v107_v26 = vsel %vm98_vm1, %v106_v22, 0.0  ;;  %v99_v32 = vsel %vm98_vm1, %v97_v31, 0.0  ;;  %p263_p2 = pnand %p261_p1, %p258_p0 }
  0x82   :  { %v178_v17 = vpop.permute.xlu1 %177 }
  0x83   :  { %vm182_vm2 = vcmp.eq.s32.totalorder %v175_v20, %v178_v17 }
  0x84   :  { %v184_v27 = vsel %vm182_vm2, %v131_v0, 0.0 }
  0x85   :  { %v186_v28 = vsel %vm149_vm0, %v184_v27, 0.0 }
  0x86   :  { %v181_v25 = vpop.permute.xlu1 %180 }
  0x87   :  { %vm183_vm3 = vcmp.eq.s32.totalorder %v175_v20, %v181_v25 }
  0x88   :  { %v185_v29 = vsel %vm183_vm3, %v132_v1, 0.0 }
  0x89   :  { %v189_v30 = vsel %vm149_vm0, %v185_v29, 0.0 }
  0x90   :  { %v152_v7 = vpop.xlane.xlu0 %151 }
  0x91   :  { %v156_v8 = vsub.f32 %v131_v0, %v152_v7 }
  0x93   :  { %v158_v9 = vmul.f32 1.442695, %v156_v8 }
  0x94   :  { %v155_v10 = vpop.xlane.xlu0 %154 }
  0x95   :  { %247 = vpow2.f32 %v158_v9  ;;  %v157_v11 = vsub.f32 %v132_v1, %v155_v10 }
  0x97   :  { %v160_v12 = vmul.f32 1.442695, %v157_v11 }
  0x99   :  { %249 = vpow2.f32 %v160_v12 }
  0x9f   :  { %v248_v16 = vpop.eup %247 }
  0xa0   :  { %v162_v19 = vsel %vm149_vm0, %v248_v16, 0.0 }
  0xa1   :  { %163 = vadd.xlane.f32.xlu0 %v162_v19 }
  0xa3   :  { %v250_v23 = vpop.eup %249 }
  0xa4   :  { %v165_v24 = vsel %vm149_vm0, %v250_v23, 0.0 }
  0xa5   :  { %166 = vadd.xlane.f32.xlu1 %v165_v24  ;;  %104 = vadd.xlane.f32.xlu0 %v103_v21 }
  0xa9   :  { %108 = vadd.xlane.f32.xlu0 %v107_v26 }
  0xad   :  { %187 = vadd.xlane.f32.xlu0 %v186_v28 }
  0xb1   :  { %190 = vadd.xlane.f32.xlu0 %v189_v30 }
  0xb5   :  { %100 = vadd.xlane.f32.xlu0 %v99_v32 }
 0x12e   :  { %v164_v33 = vpop.xlane.xlu0 %163 }
 0x12f   :  { %251 = vlog2.f32 %v164_v33 }
 0x132   :  { %v167_v34 = vpop.xlane.xlu1 %166  ;;  %v105_v35 = vpop.xlane.xlu0 %104 }
 0x133   :  { %253 = vlog2.f32 %v167_v34 }
 0x136   :  { %v109_v36 = vpop.xlane.xlu0 %108 }
 0x137   :  { %v110_v37 = vmul.f32 %v109_v36, %v105_v35 }
 0x139   :  { %v252_v38 = vpop.eup %251  ;;  %v111_v39 = vadd.f32 1e-24, %v110_v37 }
 0x13a   :  { %v169_v40 = vmul.f32 0.6931472, %v252_v38  ;;  %v188_v41 = vpop.xlane.xlu0 %187 }
 0x13b   :  { %255 = vrsqrt.f32 %v111_v39 }
 0x13c   :  { %v172_v42 = vadd.f32 %v169_v40, %v152_v7 }
 0x13d   :  { %v254_v43 = vpop.eup %253 }
 0x13e   :  { %v171_v44 = vmul.f32 0.6931472, %v254_v43  ;;  %v192_v45 = vsub.f32 %v172_v42, %v188_v41  ;;  %v191_v46 = vpop.xlane.xlu0 %190 }
 0x140   :  { %v173_v47 = vadd.f32 %v171_v44, %v155_v10  ;;  %v194_v48 = vsel %vm143_vm4, %v192_v45, 0.0 }
 0x141   :  { %v198_v53 = vsel %vm197_vm6, %v194_v48, 0.0 }
 0x142   :  { %v193_v49 = vsub.f32 %v173_v47, %v191_v46  ;;  %v101_v50 = vpop.xlane.xlu0 %100 }
 0x144   :  { %v195_v51 = vsel %vm144_vm5, %v193_v49, 0.0 }
 0x145   :  { %v256_v52 = vpop.eup %255  ;;  %v199_v54 = vsel %vm197_vm6, %v195_v51, 0.0 }
 0x146   :  { %v113_v55 = vmul.f32 %v256_v52, %v101_v50  ;;  %v200_v56 = vadd.f32 %v199_v54, %v198_v53 }
 0x148   :  { %v114_v57 = vsub.f32 1.0, %v113_v55 }
 0x14a   :  { %v116_v58 = vsel %vm115_vm7, %v114_v57, 0.0 }
 0x14b   :  { %117 = vadd.xlane.f32.xlu0 %v116_v58 }
 0x14f   :  { %201 = vadd.xlane.f32.xlu0 %v200_v56 }
 0x1d8   :  { %v118_v59 = vpop.xlane.xlu0 %117 }
 0x1d9   :  { %v119_v60 = vrot.slane %v118_v59, 4 }
 0x1db   :  { %v120_v61 = vadd.f32 %v119_v60, %v118_v59 }
 0x1dc   :  { %v202_v62 = vpop.xlane.xlu0 %201 }
 0x1dd   :  { %v121_v63 = vrot.slane %v120_v61, 2  ;;  %v203_v0 = vrot.slane %v202_v62, 4 }
 0x1df   :  { %v204_v1 = vadd.f32 %v203_v0, %v202_v62  ;;  %v122_v2 = vadd.f32 %v121_v63, %v120_v61 }
 0x1e1   :  { %v205_v3 = vrot.slane %v204_v1, 2  ;;  %v123_v4 = vrot.slane %v122_v2, 1 }
 0x1e3   :  { %v206_v5 = vadd.f32 %v205_v3, %v204_v1  ;;  %v124_v6 = vadd.f32 %v123_v4, %v122_v2 }
 0x1e5   :  { %238 = vpush %v124_v6  ;;  %v207_v7 = vrot.slane %v206_v5, 1 }
 0x1e7   :  { %v208_v8 = vadd.f32 %v207_v7, %v206_v5 }
 0x1e9   :  { %240 = vpush %v208_v8 }
 0x216   :  { %s239_s0 = spop %238 }
 0x217   :  { %s128_s1 = smul.f32 0.5, %s239_s0 }
 0x219   :  { %130 = sst [smem:[#allocation2 + $0x1]] %s128_s1 }
 0x21a   :  { %s241_s25 = spop %240 }
 0x21b   :  { %212 = sst [smem:[#allocation2]] %s241_s25 }
 0x21c   :  { %266 = shalt.err (!%p263_p2)
}
 0x21d   :  { %s270_s7 = smov [#allocation2]  }
 0x21e   :  { %220 = dma.smem_to_hbm %s270_s7, 16, %s347_s4, [#allocation3]  }
 0x21f   :  { %267 = dma.done.wait [#allocation3], 16  }
 0x220   :  { %268 = vsyncadd [#allocation3], 4294967280 }
 0x221   :  { %224 = sfence }
 0x222   :  { %225 = vsyncpa [#allocation3], 1 }

</bundles_post_ra>
